<compile_context>
chip_gen: v6e
topology: v6e:2x2x1
jax: 0.10.0
libtpu: 0.0.40
codegen_flags: <defaults>
</compile_context>

<pallas_src>
import math

import jax
import jax.numpy as jnp
from jax.experimental import pallas as pl
from jax.experimental.pallas import tpu as pltpu

LN_EPS = 1e-5  # nn.LayerNorm default


# ----------------------------------------------------------------------------
# Kernel
# ----------------------------------------------------------------------------
def _patch_merge_kernel(x_ref, wa_ref, wb_ref, bias_ref, o_ref):
    # x_ref   : (tr, 2, W2, 2C)  contiguous input slab (native dtype)
    #           parity 0 (even input row) lanes hold [x0 | x2]
    #           parity 1 (odd  input row) lanes hold [x1 | x3]
    # wa_ref  : (2C, out_dim) bf16  gamma-folded weight rows for [x0 ; x2]
    # wb_ref  : (2C, out_dim) bf16  gamma-folded weight rows for [x1 ; x3]
    # bias_ref: (1, out_dim)  f32   beta @ W
    # o_ref   : (tr*W2, out_dim)    consumer dtype
    tr, _, w2, c2 = x_ref.shape
    rows = tr * w2
    inv_n = 1.0 / (2.0 * c2)  # 1 / (4*C)

    # 3-D views (no reshape yet -> no sublane relayout when W2 % 8 != 0).
    a32 = x_ref[:, 0, :, :].astype(jnp.float32)   # (tr, w2, c2)
    b32 = x_ref[:, 1, :, :].astype(jnp.float32)   # (tr, w2, c2)

    # One-pass LayerNorm statistics over the virtual 4C feature axis.
    s = jnp.sum(a32, axis=-1, keepdims=True) + jnp.sum(b32, axis=-1, keepdims=True)
    sq = (jnp.sum(a32 * a32, axis=-1, keepdims=True)
          + jnp.sum(b32 * b32, axis=-1, keepdims=True))
    mean = s * inv_n
    var = jnp.maximum(sq * inv_n - mean * mean, 0.0)   # clamp: no NaN from rsqrt
    inv_std = jax.lax.rsqrt(var + LN_EPS)

    # f32 LN math, bf16 MXU operands; reshape only the bf16 tensors.
    an = ((a32 - mean) * inv_std).astype(wa_ref.dtype).reshape(rows, c2)
    bn = ((b32 - mean) * inv_std).astype(wb_ref.dtype).reshape(rows, c2)

    y = jnp.dot(an, wa_ref[...], preferred_element_type=jnp.float32)
    y = y + jnp.dot(bn, wb_ref[...], preferred_element_type=jnp.float32)
    y = y + bias_ref[...]
    o_ref[...] = y.astype(o_ref.dtype)


# ----------------------------------------------------------------------------
# Wrapper helpers
# ----------------------------------------------------------------------------
def _single_buffered_mode():
    """pl.Buffered(1) if this JAX supports per-operand pipeline_mode."""
    if not hasattr(pl, "Buffered"):
        return None
    try:
        mode = pl.Buffered(1)
        pl.BlockSpec((8, 128), lambda i: (0, 0), pipeline_mode=mode)
        return mode
    except Exception:  # pragma: no cover - older JAX
        return None


_SINGLE_BUF = _single_buffered_mode()


def _const_spec(block_shape, index_map):
    """BlockSpec for a grid-invariant operand: single VMEM buffer if possible."""
    if _SINGLE_BUF is not None:
        return pl.BlockSpec(block_shape, index_map, pipeline_mode=_SINGLE_BUF)
    return pl.BlockSpec(block_shape, index_map)


def _vmem_capacity_bytes():
    try:
        cap = getattr(pltpu.get_tpu_info(), "vmem_capacity_bytes", None)
        if cap:
            return int(cap)
    except Exception:
        pass
    return 64 * 1024 * 1024  # conservative (v7x per-TensorCore VMEM)


def _pick_row_block(n_groups, w2, target_rows):
    """#row-pair groups per grid step.

    rows_blk = tr*w2 must be a multiple of 8 (output sublane rule) unless the
    block covers the whole output; prefer >= 2 (roughly balanced) grid steps so
    both v7x TensorCores get work; aim for ~target_rows merged tokens / step.
    """
    step = 8 // math.gcd(w2, 8)                    # smallest valid tr
    cap = pl.cdiv(n_groups, 2) if n_groups >= 2 else n_groups
    target_tr = max(1, target_rows // max(w2, 1))
    tr = (min(target_tr, cap) // step) * step      # round down to valid multiple
    if tr >= 1:
        return min(tr, n_groups), step
    if step < n_groups:                            # unbalanced, but still >= 2 steps
        return step, step
    return n_groups, step                          # single full-extent block


def _vmem_bytes(tr, w2, c2, out_dim, in_isz, out_isz, w_bufs):
    """VMEM estimate incl. pipeline buffers AND in-kernel temporaries."""
    rows = tr * w2
    slab = tr * 2 * w2 * c2 * in_isz
    b = 2 * slab                                   # input slab, double-buffered
    b += w_bufs * 2 * c2 * out_dim * 2             # bf16 weight halves
    b += w_bufs * out_dim * 4                      # f32 bias
    b += 2 * rows * out_dim * out_isz              # output tile, double-buffered
    b += rows * c2 * 8                             # a32, b32 f32 copies
    b += rows * c2 * 4 * 2                         # an, bn bf16 (+ relayout copy)
    b += rows * out_dim * 4                        # f32 matmul accumulator
    b += rows * 512                                # LN stat vectors / misc headroom
    return b


# ----------------------------------------------------------------------------
# Public forward
# ----------------------------------------------------------------------------
def patch_merging_forward(x, input_resolution, gamma, beta, weight_t, *,
                          target_rows=None, out_dtype=None):
    """x: (B, H*W, C) -> (B, H*W//4, out_dim).

    Matches PyTorch PatchMerging: 2x2 merge -> LayerNorm(4C) ->
    Linear(4C, out_dim, bias=False) -> Identity.

    Pass x already in bf16 (don't pre-cast here) if the model runs in bf16;
    the kernel upcasts to f32 for the LN math. Output dtype follows x (or
    `out_dtype` if given).
    """
    H, W = input_resolution
    B, L, C = x.shape
    assert L == H * W, "input feature has wrong size"
    assert H % 2 == 0 and W % 2 == 0, "x size not even"

    C2, C4 = 2 * C, 4 * C
    W2 = W // 2
    N = B * (H // 2)          # (batch, input-row-pair) groups
    M = N * W2                # merged tokens
    out_dim = weight_t.shape[1]
    assert weight_t.shape[0] == C4
    out_dtype = jnp.dtype(x.dtype if out_dtype is None else out_dtype)

    # ---- trace-time parameter prep -----------------------------------------
    # Fold gamma into the weight and beta into a bias; permute weight rows so
    # the kernel never has to concatenate along lanes.
    w_prime = gamma.astype(jnp.float32)[:, None] * weight_t.astype(jnp.float32)
    bias = (beta.astype(jnp.float32) @ weight_t.astype(jnp.float32)).reshape(1, out_dim)
    w_a = jnp.concatenate([w_prime[0:C], w_prime[2 * C:3 * C]], axis=0).astype(jnp.bfloat16)
    w_b = jnp.concatenate([w_prime[C:2 * C], w_prime[3 * C:4 * C]], axis=0).astype(jnp.bfloat16)

    # Free, contiguous reshape: (B, H*W, C) -> (N, 2, W/2, 2C).
    x4 = x.reshape(N, 2, W2, C2)

    # ---- tiling (generation-aware via VMEM capacity) ------------------------
    in_isz = x.dtype.itemsize
    out_isz = out_dtype.itemsize
    cap = _vmem_capacity_bytes()
    if target_rows is None:
        target_rows = 256 if cap <= 64 * 1024 * 1024 else 512
    budget = cap // 2
    w_bufs = 1 if _SINGLE_BUF is not None else 2

    tr, step = _pick_row_block(N, W2, target_rows)
    while tr > step and _vmem_bytes(tr, W2, C2, out_dim, in_isz, out_isz, w_bufs) > budget:
        tr = max(step, ((tr - step) // step) * step)
    rows_blk = tr * W2
    grid = (pl.cdiv(N, tr),)

    need = _vmem_bytes(tr, W2, C2, out_dim, in_isz, out_isz, w_bufs)
    vmem_limit = int(min(cap * 9 // 10, max(need * 3 // 2, 32 * 1024 * 1024)))

    cost = pl.CostEstimate(
        flops=int(2 * M * C4 * out_dim + 8 * M * C4),
        transcendentals=int(M),
        bytes_accessed=int(x4.size * in_isz + (w_a.size + w_b.size) * 2
                           + bias.size * 4 + M * out_dim * out_isz),
    )

    out = pl.pallas_call(
        _patch_merge_kernel,
        out_shape=jax.ShapeDtypeStruct((M, out_dim), out_dtype),
        grid_spec=pltpu.PrefetchScalarGridSpec(
            num_scalar_prefetch=0,
            grid=grid,
            in_specs=[
                pl.BlockSpec((tr, 2, W2, C2), lambda i: (i, 0, 0, 0)),
                _const_spec((C2, out_dim), lambda i: (0, 0)),
                _const_spec((C2, out_dim), lambda i: (0, 0)),
                _const_spec((1, out_dim), lambda i: (0, 0)),
            ],
            out_specs=pl.BlockSpec((rows_blk, out_dim), lambda i: (i, 0)),
        ),
        compiler_params=pltpu.CompilerParams(
            dimension_semantics=("parallel",),
            vmem_limit_bytes=vmem_limit,
        ),
        cost_estimate=cost,
    )(x4, w_a, w_b, bias)

    return out.reshape(B, (H // 2) * W2, out_dim)


# ----------------------------------------------------------------------------
# Pure-JAX reference (matches the PyTorch module)
# ----------------------------------------------------------------------------
def _reference(x, input_resolution, gamma, beta, weight_t):
    H, W = input_resolution
    B, L, C = x.shape
    xv = x.reshape(B, H, W, C)
    x0 = xv[:, 0::2, 0::2, :]
    x1 = xv[:, 1::2, 0::2, :]
    x2 = xv[:, 0::2, 1::2, :]
    x3 = xv[:, 1::2, 1::2, :]
    xm = jnp.concatenate([x0, x1, x2, x3], axis=-1).reshape(B, -1, 4 * C)
    xm = xm.astype(jnp.float32)
    mean = jnp.mean(xm, axis=-1, keepdims=True)
    var = jnp.mean((xm - mean) ** 2, axis=-1, keepdims=True)
    xn = (xm - mean) * jax.lax.rsqrt(var + LN_EPS) * gamma + beta
    return jnp.einsum("blk,ko->blo", xn, weight_t.astype(jnp.float32))


if __name__ == "__main__":
    # Module config: input_resolution=(16,16), dim=32 -> 4*dim=128, out_dim=64
    B, H, W, C = 2, 16, 16, 32
    out_dim = 2 * C

    key = jax.random.PRNGKey(0)
    kx, kg, kb, kw = jax.random.split(key, 4)

    x = jax.random.normal(kx, (B, H * W, C), dtype=jnp.float32)
    gamma = 1.0 + 0.02 * jax.random.normal(kg, (4 * C,), dtype=jnp.float32)
    beta = 0.02 * jax.random.normal(kb, (4 * C,), dtype=jnp.float32)
    # nn.Linear(4*dim, out_dim, bias=False): weight (out_dim, 4*dim); pass transposed.
    weight_t = (jax.random.normal(kw, (4 * C, out_dim), dtype=jnp.float32)
                / jnp.sqrt(4.0 * C))

    y_ref = _reference(x, (H, W), gamma, beta, weight_t)

    # f32 path (small target_rows so the demo grid has >1 parallel step).
    y = patch_merging_forward(x, (H, W), gamma, beta, weight_t, target_rows=64)
    y = jax.block_until_ready(y)
    assert y.shape == (B, (H // 2) * (W // 2), out_dim)
    assert y.dtype == x.dtype
    max_err = float(jnp.max(jnp.abs(y - y_ref)))
    # bf16 MXU operands (f32 accumulation) -> slightly looser tolerance.
    assert jnp.allclose(y, y_ref, atol=3e-2, rtol=3e-2), (
        f"f32-path mismatch vs reference (max abs err {max_err})")

    # bf16 activation path: producer supplies bf16, output follows input dtype
    # (halves both input and output HBM traffic for this mem-bound kernel).
    y_bf = patch_merging_forward(x.astype(jnp.bfloat16), (H, W), gamma, beta, weight_t)
    y_bf = jax.block_until_ready(y_bf)
    assert y_bf.dtype == jnp.bfloat16
    max_err_bf = float(jnp.max(jnp.abs(y_bf.astype(jnp.float32) - y_ref)))
    assert jnp.allclose(y_bf.astype(jnp.float32), y_ref, atol=1e-1, rtol=1e-1), (
        f"bf16-path mismatch vs reference (max abs err {max_err_bf})")

    print("KERNEL_OK")
</pallas_src>

<mosaic_0001>
module attributes {stable_mosaic.version = 11 : i64} {
  func.func @_patch_merge_kernel(%arg0: i32, %arg1: memref<8x2x8x64xf32, #tpu.memory_space<vmem>>, %arg2: memref<64x64xbf16, #tpu.memory_space<vmem>>, %arg3: memref<64x64xbf16, #tpu.memory_space<vmem>>, %arg4: memref<1x64xf32, #tpu.memory_space<vmem>>, %arg5: memref<64x64xf32, #tpu.memory_space<vmem>>) attributes {dimension_semantics = [#tpu.dimension_semantics<parallel>], iteration_bounds = array<i64: 2>, scalar_prefetch = 0 : i64, scratch_operands = 0 : i64, tpu.core_type = #tpu.core_type<tc>, window_params = [{transform_indices = @transform_0, window_bounds = array<i64: 8, 2, 8, 64>}, {pipeline_mode = #tpu.pipeline_mode<synchronous>, transform_indices = @transform_1, window_bounds = array<i64: 64, 64>}, {pipeline_mode = #tpu.pipeline_mode<synchronous>, transform_indices = @transform_2, window_bounds = array<i64: 64, 64>}, {pipeline_mode = #tpu.pipeline_mode<synchronous>, transform_indices = @transform_3, window_bounds = array<i64: 1, 64>}, {transform_indices = @transform_4, window_bounds = array<i64: 64, 64>}]} {
    %c0 = arith.constant 0 : index
    %c0_0 = arith.constant 0 : index
    %c0_1 = arith.constant 0 : index
    %c0_2 = arith.constant 0 : index
    %0 = vector.load %arg1[%c0, %c0_0, %c0_1, %c0_2] : memref<8x2x8x64xf32, #tpu.memory_space<vmem>>, vector<8x1x8x64xf32>
    %1 = vector.shape_cast %0 : vector<8x1x8x64xf32> to vector<8x8x64xf32>
    %c0_3 = arith.constant 0 : index
    %c1 = arith.constant 1 : index
    %c0_4 = arith.constant 0 : index
    %c0_5 = arith.constant 0 : index
    %2 = vector.load %arg1[%c0_3, %c1, %c0_4, %c0_5] : memref<8x2x8x64xf32, #tpu.memory_space<vmem>>, vector<8x1x8x64xf32>
    %3 = vector.shape_cast %2 : vector<8x1x8x64xf32> to vector<8x8x64xf32>
    %cst = arith.constant dense<0.000000e+00> : vector<8x8xf32>
    %4 = vector.multi_reduction <add>, %1, %cst [2] : vector<8x8x64xf32> to vector<8x8xf32>
    %5 = vector.shape_cast %4 : vector<8x8xf32> to vector<8x8x1xf32>
    %cst_6 = arith.constant dense<0.000000e+00> : vector<8x8xf32>
    %6 = vector.multi_reduction <add>, %3, %cst_6 [2] : vector<8x8x64xf32> to vector<8x8xf32>
    %7 = vector.shape_cast %6 : vector<8x8xf32> to vector<8x8x1xf32>
    %8 = arith.addf %5, %7 : vector<8x8x1xf32>
    %9 = arith.mulf %1, %1 : vector<8x8x64xf32>
    %cst_7 = arith.constant dense<0.000000e+00> : vector<8x8xf32>
    %10 = vector.multi_reduction <add>, %9, %cst_7 [2] : vector<8x8x64xf32> to vector<8x8xf32>
    %11 = vector.shape_cast %10 : vector<8x8xf32> to vector<8x8x1xf32>
    %12 = arith.mulf %3, %3 : vector<8x8x64xf32>
    %cst_8 = arith.constant dense<0.000000e+00> : vector<8x8xf32>
    %13 = vector.multi_reduction <add>, %12, %cst_8 [2] : vector<8x8x64xf32> to vector<8x8xf32>
    %14 = vector.shape_cast %13 : vector<8x8xf32> to vector<8x8x1xf32>
    %15 = arith.addf %11, %14 : vector<8x8x1xf32>
    %cst_9 = arith.constant 7.812500e-03 : f32
    %16 = vector.broadcast %cst_9 : f32 to vector<8x8x1xf32>
    %17 = arith.mulf %8, %16 : vector<8x8x1xf32>
    %cst_10 = arith.constant 7.812500e-03 : f32
    %18 = vector.broadcast %cst_10 : f32 to vector<8x8x1xf32>
    %19 = arith.mulf %15, %18 : vector<8x8x1xf32>
    %20 = arith.mulf %17, %17 : vector<8x8x1xf32>
    %21 = arith.subf %19, %20 : vector<8x8x1xf32>
    %cst_11 = arith.constant 0.000000e+00 : f32
    %22 = vector.broadcast %cst_11 : f32 to vector<8x8x1xf32>
    %23 = arith.maximumf %21, %22 : vector<8x8x1xf32>
    %cst_12 = arith.constant 9.99999974E-6 : f32
    %24 = vector.broadcast %cst_12 : f32 to vector<8x8x1xf32>
    %25 = arith.addf %23, %24 : vector<8x8x1xf32>
    %26 = math.rsqrt %25 : vector<8x8x1xf32>
    %27 = vector.broadcast %17 : vector<8x8x1xf32> to vector<8x8x64xf32>
    %28 = arith.subf %1, %27 : vector<8x8x64xf32>
    %29 = vector.broadcast %26 : vector<8x8x1xf32> to vector<8x8x64xf32>
    %30 = arith.mulf %28, %29 : vector<8x8x64xf32>
    %31 = arith.truncf %30 : vector<8x8x64xf32> to vector<8x8x64xbf16>
    %32 = vector.shape_cast %31 : vector<8x8x64xbf16> to vector<64x64xbf16>
    %33 = vector.broadcast %17 : vector<8x8x1xf32> to vector<8x8x64xf32>
    %34 = arith.subf %3, %33 : vector<8x8x64xf32>
    %35 = vector.broadcast %26 : vector<8x8x1xf32> to vector<8x8x64xf32>
    %36 = arith.mulf %34, %35 : vector<8x8x64xf32>
    %37 = arith.truncf %36 : vector<8x8x64xf32> to vector<8x8x64xbf16>
    %38 = vector.shape_cast %37 : vector<8x8x64xbf16> to vector<64x64xbf16>
    %c0_13 = arith.constant 0 : index
    %c0_14 = arith.constant 0 : index
    %39 = vector.load %arg2[%c0_13, %c0_14] : memref<64x64xbf16, #tpu.memory_space<vmem>>, vector<64x64xbf16>
    %cst_15 = arith.constant dense<0.000000e+00> : vector<64x64xf32>
    %40 = tpu.matmul %32, %39, %cst_15 {dimension_numbers = #tpu.dot_dimension_numbers<[1], [0], [0], [1], [0, 0, 1, 1], [], []>} : vector<64x64xbf16>, vector<64x64xbf16>, vector<64x64xf32> -> vector<64x64xf32>
    %c0_16 = arith.constant 0 : index
    %c0_17 = arith.constant 0 : index
    %41 = vector.load %arg3[%c0_16, %c0_17] : memref<64x64xbf16, #tpu.memory_space<vmem>>, vector<64x64xbf16>
    %cst_18 = arith.constant dense<0.000000e+00> : vector<64x64xf32>
    %42 = tpu.matmul %38, %41, %cst_18 {dimension_numbers = #tpu.dot_dimension_numbers<[1], [0], [0], [1], [0, 0, 1, 1], [], []>} : vector<64x64xbf16>, vector<64x64xbf16>, vector<64x64xf32> -> vector<64x64xf32>
    %43 = arith.addf %40, %42 : vector<64x64xf32>
    %c0_19 = arith.constant 0 : index
    %c0_20 = arith.constant 0 : index
    %44 = vector.load %arg4[%c0_19, %c0_20] : memref<1x64xf32, #tpu.memory_space<vmem>>, vector<1x64xf32>
    %45 = vector.broadcast %44 : vector<1x64xf32> to vector<64x64xf32>
    %46 = arith.addf %43, %45 : vector<64x64xf32>
    %c0_21 = arith.constant 0 : index
    %c0_22 = arith.constant 0 : index
    %47 = vector.load %arg5[%c0_21, %c0_22] : memref<64x64xf32, #tpu.memory_space<vmem>>, vector<64x64xf32>
    tpu.vector_store %arg5[%c0_21, %c0_22], %46 {strides = array<i32>} : memref<64x64xf32, #tpu.memory_space<vmem>>, vector<64x64xf32>,
    return
  }
  func.func @transform_0(%arg0: i32) -> (i32, i32, i32, i32) {
    %c0_i32 = arith.constant 0 : i32
    %c0_i32_0 = arith.constant 0 : i32
    %c0_i32_1 = arith.constant 0 : i32
    %c0_i32_2 = arith.constant 0 : i32
    return %arg0, %c0_i32, %c0_i32_0, %c0_i32_1 : i32, i32, i32, i32
  }
  func.func @transform_1(%arg0: i32) -> (i32, i32) {
    %c0_i32 = arith.constant 0 : i32
    %c0_i32_0 = arith.constant 0 : i32
    %c0_i32_1 = arith.constant 0 : i32
    return %c0_i32, %c0_i32_0 : i32, i32
  }
  func.func @transform_2(%arg0: i32) -> (i32, i32) {
    %c0_i32 = arith.constant 0 : i32
    %c0_i32_0 = arith.constant 0 : i32
    %c0_i32_1 = arith.constant 0 : i32
    return %c0_i32, %c0_i32_0 : i32, i32
  }
  func.func @transform_3(%arg0: i32) -> (i32, i32) {
    %c0_i32 = arith.constant 0 : i32
    %c0_i32_0 = arith.constant 0 : i32
    %c0_i32_1 = arith.constant 0 : i32
    return %c0_i32, %c0_i32_0 : i32, i32
  }
  func.func @transform_4(%arg0: i32) -> (i32, i32) {
    %c0_i32 = arith.constant 0 : i32
    %c0_i32_0 = arith.constant 0 : i32
    return %arg0, %c0_i32 : i32, i32
  }
}

</mosaic_0001>

<bundles_post_ra>
// kernel: tpu_custom_call.1
= control target key start
LH: loop header
LB: loop body
LE: loop exit
PB: predicated region body
PF: predicated region fallthrough
CT: control target
= control target key end

     0   :  { %9 = vsyncpa [#allocation3], 0  ;;  %s1550_s0 = inlined_call_operand.hbm [shape: f32[16,2,8,64], index: 0, kind: input, shape index: {}]   ;;  %s1551_s1 = inlined_call_operand.hbm [shape: bf16[64,64], index: 1, kind: input, shape index: {}]   ;;  %s1552_s2 = inlined_call_operand.hbm [shape: bf16[64,64], index: 2, kind: input, shape index: {}]   ;;  %s1553_s3 = inlined_call_operand.vmem [shape: f32[1,64], index: 3, kind: input, shape index: {}]   ;;  %s1554_s4 = inlined_call_operand.vmem [shape: f32[128,64], index: 4, kind: output, shape index: {}]  }
   0x1   :  { %11 = vsyncpa [#allocation3 + $0x1], 0 }
   0x2   :  { %12 = vsyncpa [#allocation5], 0  ;;  %s1217_s15 = smov 0   ;;  %s1219_s16 = smov 0  }
   0x3   :  { %s1221_s17 = smov 0   ;;  %s1223_s18 = smov 0  }
   0x4 LB: > { %s868_s19 = sadd.s32 4294967295, %s1183_s18   ;;  %p38_p0 = scmp.ne.s32.totalorder %s1175_s16, %s1171_s15  ;;  %s1183_s18 = sphi %s1223_s18, %s1570_s18   ;;  %s1179_s17 = sphi %s1221_s17, %s1569_s17   ;;  %s1175_s16 = sphi %s1219_s16, %s1568_s16   ;;  %s1171_s15 = sphi %s1217_s15, %s1567_s15  }
   0x5   : > { %p1239_p1 = scmp.eq.s32.totalorder %s868_s19, 0  ;;  %p870_p2 = scmp.ge.s32.totalorder %s1183_s18, 1 }
   0x6   : > { %p138_p3 = scmp.lt.s32.totalorder %s1183_s18, 3  ;;  %s1185_s23 = smov [#allocation4]  }
   0x7   : > { %s1559_s20 = scalar_select %p1239_p1, 1, 0 }
   0x8   : > { %p1247_p4 = por %p1239_p1, %p38_p0  ;;  %p1251_p5 = pnand %p870_p2, %p138_p3 }
   0x9   : > { %s150_s24 = sshll.u32 %s1185_s23, 4  ;;  %s1186_s26 = smov [#allocation6]   ;;  %s151_s24 = int_to_ptr.vmem [resolvable:$true] %s150_s24 }
   0xa   : > { %s1560_s21 = scalar_select %p1247_p4, 1, 0 }
   0xb   : > { %s1561_s22 = scalar_select %p1251_p5, 1, 0 }
   0xc   : > { %p987_p6 = pneg %p1251_p5  ;;  %s163_s27 = sshll.u32 %s1186_s26, 4  ;;  %s164_s27 = int_to_ptr.vmem [resolvable:$true] %s163_s27 }
   0xd   : > { %s1076_s28 = scalar_lea.vmem %s151_s24, 512  ;;  %p1084_p12 = scmp.lt.s32.totalorder %s151_s24, %s151_s24 }
   0xe   : > { %p1259_p7 = pnand %p987_p6, %p1239_p1  ;;  %p1077_p9 = scmp.ne.s32.totalorder %s151_s24, %s1076_s28 }
   0xf   : > { %p1085_p13 = scmp.lt.s32.totalorder %s1076_s28, %s1076_s28 }
  0x10   : > { %p1067_p8 = pneg %p1259_p7 }
  0x11   : > { %p1086_p0 = por %p1085_p13, %p1084_p12 }
  0x12   : > { %p1079_p10 = pnand %p1077_p9, %p1067_p8 }
  0x14   : > { %p1080_p11 = pneg %p1079_p10 }
  0x16   : > { %p1087_p2 = pnand %p1086_p0, %p1080_p11 }
  0x18   : > { %1090 = shalt.err (!%p1087_p2)
}
  0x19   : > { %s1187_s29 = smov 64   ;;  %s1188_s30 = smov 4  }
  0x1a   : > { %990 = dma.hbm_to_vmem [thread:$0]  (!%p1259_p7), %s1551_s1, 512, %s151_s24, [#allocation5], %s1187_s29, %s1187_s29, %s1188_s30  }
  0x1b   : > { %s1102_s7 = scalar_lea.vmem %s164_s27, 512  ;;  %p1110_p10 = scmp.lt.s32.totalorder %s164_s27, %s164_s27 }
  0x1c   : > { %p1103_p3 = scmp.ne.s32.totalorder %s164_s27, %s1102_s7  ;;  %p1111_p1 = scmp.lt.s32.totalorder %s1102_s7, %s1102_s7 }
  0x1e   : > { %p1105_p6 = pnand %p1103_p3, %p1067_p8  ;;  %p1112_p12 = por %p1111_p1, %p1110_p10 }
  0x20   : > { %p1106_p9 = pneg %p1105_p6 }
  0x22   : > { %p1113_p11 = pnand %p1112_p12, %p1106_p9 }
  0x24   : > { %1116 = shalt.err (!%p1113_p11)
}
  0x25   : > { %993 = dma.hbm_to_vmem [thread:$0]  (!%p1259_p7), %s1552_s2, 512, %s164_s27, [#allocation5], %s1187_s29, %s1187_s29, %s1188_s30  }
  0x26   : > { %s1282_s10 = sadd.s32 1, %s1183_s18   ;;  %s25_s11 = sadd.s32 1, %s1179_s17 }
  0x27   : > { %s22_s12 = ssub.s32 %s1183_s18, %s1282_s10  ;;  %p32_p1 = scmp.ne.s32.totalorder %s1179_s17, %s1175_s16 }
  0x28   : > { %p23_p8 = scmp.eq.s32.totalorder %s22_s12, 0  ;;  %p33_p13 = scmp.eq.s32.totalorder %s1183_s18, 0 }
  0x29   : > { %p1000_p0 = scmp.lt.s32.totalorder %s1183_s18, 2  ;;  %s180_s13 = sand.u32 1, %s1179_s17  }
  0x2a   : > { %s1293_s14 = scalar_select %p23_p8, %s1179_s17, %s25_s11  }
  0x2b   : > { %p34_p2 = por %p33_p13, %p32_p1  ;;  %s874_s15 = sshll.u32 %s180_s13, 7 }
  0x2c   : > { %s920_s23 = sshll.u32 %s1183_s18, 11  ;;  %s184_s27 = scalar_lea.vmem [#allocation2], %s874_s15 }
  0x2d   : > { %s1299_s26 = scalar_lea.hbm %s1550_s0, %s920_s23  ;;  %s192_s28 = sshll.u32 %s184_s27, 4  ;;  %s1305_s28 = int_to_ptr.vmem [resolvable:$true] %s192_s28 }
  0x2e   : > { %p1301_p7 = pnand %p1000_p0, %p34_p2  ;;  %s1307_s30 = scalar_lea.sflag [#allocation3], %s180_s13 }
  0x2f   : > { %s1117_s5 = scalar_lea.hbm %s1299_s26, 2048  ;;  %s1122_s8 = scalar_lea.hbm %s1550_s0, 4096 }
  0x30   : > { %p1118_p3 = scmp.ne.s32.totalorder %s1299_s26, %s1117_s5  ;;  %p1119_p6 = pneg %p1301_p7 }
  0x31   : > { %p1123_p12 = scmp.lt.s32.totalorder %s1299_s26, %s1550_s0  ;;  %p1124_p11 = scmp.lt.s32.totalorder %s1122_s8, %s1117_s5 }
  0x32   : > { %p1120_p9 = pnand %p1119_p6, %p1118_p3 }
  0x33   : > { %p1125_p1 = por %p1124_p11, %p1123_p12 }
  0x34   : > { %p1121_p10 = pneg %p1120_p9 }
  0x36   : > { %p1126_p8 = pnand %p1125_p1, %p1121_p10 }
  0x38   : > { %1129 = shalt.err (!%p1126_p8)
}
  0x39   : > { %s1130_s12 = scalar_lea.vmem %s1305_s28, 2048  ;;  %s1189_s13 = smov [#allocation2]  }
  0x3a   : > { %p1131_p13 = scmp.ne.s32.totalorder %s1305_s28, %s1130_s12  ;;  %s1135_s15 = sshll.u32 %s1189_s13, 4  ;;  %s1136_s15 = int_to_ptr.vmem [resolvable:$false] %s1135_s15 }
  0x3b   : > { %s1137_s23 = scalar_lea.vmem %s1136_s15, 4096  ;;  %p1138_p3 = scmp.lt.s32.totalorder %s1305_s28, %s1136_s15 }
  0x3c   : > { %p1133_p0 = pnand %p1131_p13, %p1119_p6  ;;  %p1139_p9 = scmp.lt.s32.totalorder %s1137_s23, %s1130_s12 }
  0x3e   : > { %p1134_p2 = pneg %p1133_p0  ;;  %p1140_p4 = por %p1139_p9, %p1138_p3 }
  0x40   : > { %p1141_p5 = pnand %p1140_p4, %p1134_p2 }
  0x42   : > { %1144 = shalt.err (!%p1141_p5)
}
  0x43   : > { %s1190_s24 = smov 128   ;;  %s1191_s25 = smov 8  }
  0x44   : > { %997 = dma.hbm_to_vmem [thread:$0]  (!%p1301_p7), %s1299_s26, 2048, %s1305_s28, %s1307_s30, %s1190_s24, %s1190_s24, %s1191_s25  }
  0x45   : > { %p1564_p6 = scmp.ne.s32.totalorder %s1561_s22, 0 }
  0x46   : > { %s206_s27 = sand.u32 (!%p1564_p6), 1, %s1175_s16   ;;  %p1565_p4 = scmp.ne.s32.totalorder (!%p1564_p6), %s1560_s21, 0 }
  0x47   : > { %204 = sbr.rel (%p1564_p6) target bundleno = 513 (0x201), region = 36  ;;  %s879_s5 = sshll.u32 (!%p1564_p6), %s206_s27, 7 }
  0x48   : > { %s207_s6 = scalar_lea.sflag (!%p1564_p6), [#allocation3], %s206_s27  ;;  %s1331_s7 = scalar_lea.vmem (!%p1564_p6), [#allocation2], %s879_s5 }
  0x4c   : > { %1162 = dma.done.wait (%p1565_p4), %s207_s6, 2048  }
  0x4d   : > { %1164 = vsyncadd (%p1565_p4), %s207_s6, 4294965248  ;;  %p1566_p5 = scmp.ne.s32.totalorder %s1559_s20, 0 }
  0x4f   : > { %1166 = dma.done.wait (%p1566_p5), [#allocation5], 1024  }
  0x50   : > { %1168 = vsyncadd (%p1566_p5), [#allocation5], 4294966272  ;;  %vm268_vm0 = vcmask 523264   ;;  %v1342_v0 = vld [vmem:[%s1331_s7 + $0x8] sm:$0xff]  ;;  %v1345_v1 = vld [vmem:[%s1331_s7] sm:$0xff]  ;;  %s882_s20 = sshll.u32 %s868_s19, 3 }
  0x51   : > { %v1348_v2 = vld [vmem:[%s1331_s7 + $0x18] sm:$0xff]  ;;  %v293_v3 = vsel %vm268_vm0, %v1342_v0, 0.0  ;;  %v269_v4 = vsel %vm268_vm0, %v1345_v1, 0.0  ;;  %v1355_v5 = vld [vmem:[%s1331_s7 + $0x10] sm:$0xff]  ;;  %v1365_v9 = vld [vmem:[%s1331_s7 + $0x20] sm:$0xff]  ;;  %v325_v17 = vmul.f32 %v1345_v1, %v1345_v1  ;;  %v357_v21 = vmul.f32 %v1342_v0, %v1342_v0  ;;  %p245_p7 = scmp.lt.s32.totalorder %s882_s20, 15 }
  0x52   : > { %294 = vadd.xlane.f32.xlu1 %v293_v3  ;;  %270 = vadd.xlane.f32.xlu0 %v269_v4  ;;  %v296_v6 = vsel %vm268_vm0, %v1348_v2, 0.0  ;;  %v272_v7 = vsel %vm268_vm0, %v1355_v5, 0.0  ;;  %v1362_v8 = vld [vmem:[%s1331_s7 + $0x30] sm:$0xff]  ;;  %v275_v11 = vsel %vm268_vm0, %v1365_v9, 0.0  ;;  %v1372_v12 = vld [vmem:[%s1331_s7 + $0x38] sm:$0xff]  ;;  %v1375_v13 = vld [vmem:[%s1331_s7 + $0x28] sm:$0xff]  ;;  %v326_v16 = vmul.f32 %v1355_v5, %v1355_v5 }
  0x53   : > { %v278_v10 = vsel %vm268_vm0, %v1362_v8, 0.0  ;;  %v302_v14 = vsel %vm268_vm0, %v1372_v12, 0.0  ;;  %v299_v15 = vsel %vm268_vm0, %v1375_v13, 0.0  ;;  %v333_v19 = vsel %vm268_vm0, %v325_v17, 0.0  ;;  %v1406_v32 = vld [vmem:[%s1331_s7 + $0x50] sm:$0xff]  ;;  %v1409_v33 = vld [vmem:[%s1331_s7 + $0x40] sm:$0xff] }
  0x54   : > { %v336_v18 = vsel %vm268_vm0, %v326_v16, 0.0  ;;  %v358_v20 = vmul.f32 %v1348_v2, %v1348_v2  ;;  %v365_v23 = vsel %vm268_vm0, %v357_v21, 0.0  ;;  %v328_v24 = vmul.f32 %v1362_v8, %v1362_v8  ;;  %v1416_v36 = vld [vmem:[%s1331_s7 + $0x58] sm:$0xff]  ;;  %v1419_v37 = vld [vmem:[%s1331_s7 + $0x48] sm:$0xff]  ;;  %v1426_v40 = vld [vmem:[%s1331_s7 + $0x70] sm:$0xff]  ;;  %s1572_s20 = smov (!%p245_p7, %s882_s20), 15 }
  0x55   : > { %v327_v25 = vmul.f32 %v1365_v9, %v1365_v9  ;;  %v360_v28 = vmul.f32 %v1372_v12, %v1372_v12  ;;  %v359_v29 = vmul.f32 %v1375_v13, %v1375_v13  ;;  %v284_v34 = vsel %vm268_vm0, %v1406_v32, 0.0  ;;  %v1429_v41 = vld [vmem:[%s1331_s7 + $0x60] sm:$0xff]  ;;  %v1436_v44 = vld [vmem:[%s1331_s7 + $0x78] sm:$0xff]  ;;  %v1439_v45 = vld [vmem:[%s1331_s7 + $0x68] sm:$0xff]  ;;  %s883_s21 = sshll.u32 %s1572_s20, 3 }
  0x56   : > { %297 = vadd.xlane.f32.xlu1 %v296_v6  ;;  %273 = vadd.xlane.f32.xlu0 %v272_v7  ;;  %v368_v22 = vsel %vm268_vm0, %v358_v20, 0.0  ;;  %v342_v26 = vsel %vm268_vm0, %v328_v24, 0.0  ;;  %v281_v35 = vsel %vm268_vm0, %v1409_v33, 0.0  ;;  %v308_v38 = vsel %vm268_vm0, %v1416_v36, 0.0  ;;  %v1041_v58 = vld [vmem:[#allocation6 + $0x18] sm:$0xff]   ;;  %v1043_v3 = vld [vmem:[#allocation6 + $0x10] sm:$0xff]   ;;  %s1519_s30 = scalar_lea.vmem %s1554_s4, %s883_s21 }
  0x57   : > { %v339_v27 = vsel %vm268_vm0, %v327_v25, 0.0  ;;  %v374_v30 = vsel %vm268_vm0, %v360_v28, 0.0  ;;  %v371_v31 = vsel %vm268_vm0, %v359_v29, 0.0  ;;  %v305_v39 = vsel %vm268_vm0, %v1419_v37, 0.0  ;;  %v1042_v59 = vld [vmem:[#allocation4 + $0x18] sm:$0xff]   ;;  %945 = vmatprep.subr.bf16.mxu0 %v1041_v58  ;;  %v1044_v4 = vld [vmem:[#allocation4 + $0x10] sm:$0xff]  }
  0x58   : > { %v290_v42 = vsel %vm268_vm0, %v1426_v40, 0.0  ;;  %v287_v43 = vsel %vm268_vm0, %v1429_v41, 0.0  ;;  %v314_v46 = vsel %vm268_vm0, %v1436_v44, 0.0  ;;  %v311_v47 = vsel %vm268_vm0, %v1439_v45, 0.0  ;;  %961 = vmatprep.subr.bf16.mxu1 %v1042_v59  ;;  %946 = vmatpush3.bf16.msra.mxu0 %v1041_v58 }
  0x59   : > { %v330_v48 = vmul.f32 %v1406_v32, %v1406_v32  ;;  %v329_v49 = vmul.f32 %v1409_v33, %v1409_v33  ;;  %v362_v52 = vmul.f32 %v1416_v36, %v1416_v36  ;;  %v361_v53 = vmul.f32 %v1419_v37, %v1419_v37  ;;  %962 = vmatpush3.bf16.msra.mxu1 %v1042_v59 }
  0x5a   : > { %279 = vadd.xlane.f32.xlu1 %v278_v10  ;;  %276 = vadd.xlane.f32.xlu0 %v275_v11  ;;  %v332_v56 = vmul.f32 %v1426_v40, %v1426_v40  ;;  %v331_v57 = vmul.f32 %v1429_v41, %v1429_v41  ;;  %v364_v62 = vmul.f32 %v1436_v44, %v1436_v44  ;;  %v1045_v10 = vld [vmem:[#allocation6 + $0x8] sm:$0xff]  }
  0x5b   : > { %v348_v50 = vsel %vm268_vm0, %v330_v48, 0.0  ;;  %v345_v51 = vsel %vm268_vm0, %v329_v49, 0.0  ;;  %v380_v54 = vsel %vm268_vm0, %v362_v52, 0.0  ;;  %v377_v55 = vsel %vm268_vm0, %v361_v53, 0.0  ;;  %947 = vmatprep.subr.bf16.mxu0 %v1043_v3  ;;  %963 = vmatprep.subr.bf16.mxu1 %v1044_v4  ;;  %v1046_v11 = vld [vmem:[#allocation4 + $0x8] sm:$0xff]  }
  0x5c   : > { %v354_v60 = vsel %vm268_vm0, %v332_v56, 0.0  ;;  %v351_v61 = vsel %vm268_vm0, %v331_v57, 0.0  ;;  %v363_v63 = vmul.f32 %v1439_v45, %v1439_v45  ;;  %v386_v6 = vsel %vm268_vm0, %v364_v62, 0.0  ;;  %948 = vmatpush3.bf16.msra.mxu0 %v1043_v3 }
  0x5d   : > { %964 = vmatpush3.bf16.msra.mxu1 %v1044_v4  ;;  %949 = vmatprep.subr.bf16.mxu0 %v1045_v10 }
  0x5e   : > { %303 = vadd.xlane.f32.xlu1 %v302_v14  ;;  %300 = vadd.xlane.f32.xlu0 %v299_v15  ;;  %v383_v7 = vsel %vm268_vm0, %v363_v63, 0.0  ;;  %v1047_v14 = vld [vmem:[#allocation6] sm:$0xff]  }
  0x5f   : > { %965 = vmatprep.subr.bf16.mxu1 %v1046_v11  ;;  %v1048_v15 = vld [vmem:[#allocation4] sm:$0xff]  }
  0x60   : > { %950 = vmatpush3.bf16.msra.mxu0 %v1045_v10 }
  0x61   : > { %966 = vmatpush3.bf16.msra.mxu1 %v1046_v11  ;;  %951 = vmatprep.subr.bf16.mxu0 %v1047_v14 }
  0x62   : > { %337 = vadd.xlane.f32.xlu1 %v336_v18  ;;  %334 = vadd.xlane.f32.xlu0 %v333_v19 }
  0x63   : > { %967 = vmatprep.subr.bf16.mxu1 %v1048_v15 }
  0x64   : > { %952 = vmatpush3.bf16.msra.mxu0 %v1047_v14 }
  0x65   : > { %968 = vmatpush3.bf16.msra.mxu1 %v1048_v15 }
  0x66   : > { %369 = vadd.xlane.f32.xlu1 %v368_v22  ;;  %366 = vadd.xlane.f32.xlu0 %v365_v23 }
  0x6a   : > { %343 = vadd.xlane.f32.xlu1 %v342_v26  ;;  %340 = vadd.xlane.f32.xlu0 %v339_v27 }
  0x6e   : > { %375 = vadd.xlane.f32.xlu1 %v374_v30  ;;  %372 = vadd.xlane.f32.xlu0 %v371_v31 }
  0x72   : > { %285 = vadd.xlane.f32.xlu1 %v284_v34  ;;  %282 = vadd.xlane.f32.xlu0 %v281_v35 }
  0x76   : > { %309 = vadd.xlane.f32.xlu1 %v308_v38  ;;  %306 = vadd.xlane.f32.xlu0 %v305_v39 }
  0x7a   : > { %291 = vadd.xlane.f32.xlu1 %v290_v42  ;;  %288 = vadd.xlane.f32.xlu0 %v287_v43 }
  0x7e   : > { %315 = vadd.xlane.f32.xlu1 %v314_v46  ;;  %312 = vadd.xlane.f32.xlu0 %v311_v47 }
  0x82   : > { %349 = vadd.xlane.f32.xlu1 %v348_v50  ;;  %346 = vadd.xlane.f32.xlu0 %v345_v51 }
  0x86   : > { %381 = vadd.xlane.f32.xlu1 %v380_v54  ;;  %378 = vadd.xlane.f32.xlu0 %v377_v55 }
  0x8a   : > { %355 = vadd.xlane.f32.xlu1 %v354_v60  ;;  %352 = vadd.xlane.f32.xlu0 %v351_v61 }
  0x8e   : > { %387 = vadd.xlane.f32.xlu1 %v386_v6  ;;  %384 = vadd.xlane.f32.xlu0 %v383_v7 }
  0xdb   : > { %v295_v16 = vpop.xlane.xlu1 %294  ;;  %v271_v17 = vpop.xlane.xlu0 %270 }
  0xdc   : > { %v317_v24 = vadd.f32 %v295_v16, %v271_v17 }
  0xde   : > { %v397_v28 = vmul.f32 0.0078125, %v317_v24 }
  0xdf   : > { %v298_v18 = vpop.xlane.xlu1 %297  ;;  %v274_v19 = vpop.xlane.xlu0 %273 }
  0xe0   : > { %v318_v25 = vadd.f32 %v298_v18, %v274_v19  ;;  %v413_v39 = vmul.f32 %v397_v28, %v397_v28 }
  0xe2   : > { %v398_v29 = vmul.f32 0.0078125, %v318_v25 }
  0xe3   : > { %v280_v20 = vpop.xlane.xlu1 %279  ;;  %v277_v21 = vpop.xlane.xlu0 %276 }
  0xe4   : > { %v414_v46 = vmul.f32 %v398_v29, %v398_v29 }
  0xe7   : > { %v304_v22 = vpop.xlane.xlu1 %303  ;;  %v301_v23 = vpop.xlane.xlu0 %300 }
  0xe8   : > { %v320_v38 = vadd.f32 %v304_v22, %v280_v20  ;;  %v319_v42 = vadd.f32 %v301_v23, %v277_v21  ;;  %v478_v22 = vsub.f32 %v1348_v2, %v398_v29  ;;  %v454_v23 = vsub.f32 %v1355_v5, %v398_v29 }
  0xea   : > { %v1469_v52 = vmul.f32 0.0078125, %v320_v38  ;;  %v1471_v53 = vmul.f32 0.0078125, %v319_v42 }
  0xeb   : > { %v338_v26 = vpop.xlane.xlu1 %337  ;;  %v335_v27 = vpop.xlane.xlu0 %334 }
  0xec   : > { %v416_v62 = vmul.f32 %v1469_v52, %v1469_v52  ;;  %v415_v3 = vmul.f32 %v1471_v53, %v1471_v53  ;;  %v455_v29 = vsub.f32 %v1365_v9, %v1471_v53 }
  0xef   : > { %v370_v30 = vpop.xlane.xlu1 %369  ;;  %v367_v31 = vpop.xlane.xlu0 %366 }
  0xf0   : > { %v390_v34 = vadd.f32 %v370_v30, %v338_v26  ;;  %v389_v35 = vadd.f32 %v367_v31, %v335_v27  ;;  %v477_v27 = vsub.f32 %v1342_v0, %v397_v28  ;;  %v453_v30 = vsub.f32 %v1345_v1, %v397_v28 }
  0xf1   : > { %v456_v0 = vsub.f32 %v1362_v8, %v1469_v52  ;;  %v480_v1 = vsub.f32 %v1372_v12, %v1469_v52 }
  0xf2   : > { %v406_v43 = vmul.f32 0.0078125, %v390_v34  ;;  %v405_v47 = vmul.f32 0.0078125, %v389_v35 }
  0xf3   : > { %v344_v48 = vpop.xlane.xlu1 %343  ;;  %v341_v49 = vpop.xlane.xlu0 %340 }
  0xf4   : > { %v422_v50 = vsub.f32 %v406_v43, %v414_v46  ;;  %v421_v51 = vsub.f32 %v405_v47, %v413_v39 }
  0xf6   : > { %v430_v54 = vmax.f32 %v422_v50, 0.0  ;;  %v429_v55 = vmax.f32 %v421_v51, 0.0  ;;  %v479_v50 = vsub.f32 %v1375_v13, %v1471_v53 }
  0xf7   : > { %v376_v56 = vpop.xlane.xlu1 %375  ;;  %v373_v57 = vpop.xlane.xlu0 %372 }
  0xf8   : > { %v438_v58 = vadd.f32 1e-05, %v430_v54  ;;  %v437_v59 = vadd.f32 1e-05, %v429_v55  ;;  %v392_v60 = vadd.f32 %v376_v56, %v344_v48  ;;  %v391_v61 = vadd.f32 %v373_v57, %v341_v49 }
  0xfa   : > { %1049 = vrsqrt.f32 %v438_v58  ;;  %v408_v63 = vmul.f32 0.0078125, %v392_v60  ;;  %v407_v4 = vmul.f32 0.0078125, %v391_v61 }
  0xfb   : > { %1051 = vrsqrt.f32 %v437_v59  ;;  %v286_v6 = vpop.xlane.xlu1 %285  ;;  %v283_v7 = vpop.xlane.xlu0 %282 }
  0xfc   : > { %v424_v10 = vsub.f32 %v408_v63, %v416_v62  ;;  %v423_v11 = vsub.f32 %v407_v4, %v415_v3 }
  0xfe   : > { %v432_v14 = vmax.f32 %v424_v10, 0.0  ;;  %v431_v15 = vmax.f32 %v423_v11, 0.0 }
  0xff   : > { %v310_v16 = vpop.xlane.xlu1 %309  ;;  %v307_v17 = vpop.xlane.xlu0 %306 }
 0x100   : > { %v440_v18 = vadd.f32 1e-05, %v432_v14  ;;  %v439_v19 = vadd.f32 1e-05, %v431_v15  ;;  %v322_v38 = vadd.f32 %v310_v16, %v286_v6  ;;  %v321_v43 = vadd.f32 %v307_v17, %v283_v7 }
 0x102   : > { %1053 = vrsqrt.f32 %v440_v18  ;;  %v1481_v49 = vmul.f32 0.0078125, %v322_v38  ;;  %v401_v5 = vmul.f32 0.0078125, %v321_v43 }
 0x103   : > { %1055 = vrsqrt.f32 %v439_v19  ;;  %v292_v20 = vpop.xlane.xlu1 %291  ;;  %v289_v21 = vpop.xlane.xlu0 %288 }
 0x104   : > { %v418_v8 = vmul.f32 %v1481_v49, %v1481_v49  ;;  %v417_v63 = vmul.f32 %v401_v5, %v401_v5  ;;  %v458_v38 = vsub.f32 %v1406_v32, %v1481_v49  ;;  %v457_v43 = vsub.f32 %v1409_v33, %v401_v5 }
 0x107   : > { %v1050_v24 = vpop.eup %1049  ;;  %v316_v25 = vpop.xlane.xlu1 %315 }
 0x108   : > { %v313_v26 = vpop.xlane.xlu0 %312  ;;  %v1052_v31 = vpop.eup %1051  ;;  %v486_v34 = vmul.f32 %v1050_v24, %v478_v22  ;;  %v462_v35 = vmul.f32 %v1050_v24, %v454_v23  ;;  %v324_v60 = vadd.f32 %v316_v25, %v292_v20 }
 0x109   : > { %v485_v39 = vmul.f32 %v1052_v31, %v477_v27  ;;  %v461_v42 = vmul.f32 %v1052_v31, %v453_v30  ;;  %v323_v61 = vadd.f32 %v313_v26, %v289_v21 }
 0x10a   : > { %v404_v10 = vmul.f32 0.0078125, %v324_v60 }
 0x10b   : > { %v350_v46 = vpop.xlane.xlu1 %349  ;;  %v921_v48 = vpack.c.bf16 %v486_v34, %v485_v39  ;;  %v925_v2 = vpack.c.bf16 %v462_v35, %v461_v42  ;;  %v403_v11 = vmul.f32 0.0078125, %v323_v61  ;;  %v482_v39 = vsub.f32 %v1416_v36, %v1481_v49 }
 0x10c   : > { %v347_v47 = vpop.xlane.xlu0 %346  ;;  %v420_v22 = vmul.f32 %v404_v10, %v404_v10  ;;  %v460_v32 = vsub.f32 %v1426_v40, %v404_v10  ;;  %v484_v36 = vsub.f32 %v1436_v44, %v404_v10  ;;  %v916_v44 = vld [vmem:[%s1553_s3] ss:$0 sm:$0xff] }
 0x10d   : > { %953 = vmatprep.mubr.msk.bf16.mxu0 %vm268_vm0, %v921_v48  ;;  %969 = vmatprep.mubr.msk.bf16.mxu1 %vm268_vm0, %v925_v2  ;;  %v419_v24 = vmul.f32 %v403_v11, %v403_v11  ;;  %v459_v33 = vsub.f32 %v1429_v41, %v403_v11 }
 0x10f   : > { %v1054_v28 = vpop.eup %1053  ;;  %v382_v51 = vpop.xlane.xlu1 %381 }
 0x110   : > { %v379_v54 = vpop.xlane.xlu0 %378  ;;  %v1056_v55 = vpop.eup %1055  ;;  %v394_v56 = vadd.f32 %v382_v51, %v350_v46  ;;  %v488_v58 = vmul.f32 %v1054_v28, %v480_v1  ;;  %v464_v59 = vmul.f32 %v1054_v28, %v456_v0  ;;  %v481_v46 = vsub.f32 %v1419_v37, %v401_v5 }
 0x111   : > { %v393_v57 = vadd.f32 %v379_v54, %v347_v47  ;;  %v487_v12 = vmul.f32 %v1056_v55, %v479_v50  ;;  %v463_v52 = vmul.f32 %v1056_v55, %v455_v29  ;;  %v483_v37 = vsub.f32 %v1439_v45, %v403_v11 }
 0x112   : > { %v410_v62 = vmul.f32 0.0078125, %v394_v56 }
 0x113   : > { %v409_v9 = vmul.f32 0.0078125, %v393_v57  ;;  %v356_v3 = vpop.xlane.xlu1 %355  ;;  %v922_v13 = vpack.c.bf16 %v488_v58, %v487_v12  ;;  %v926_v53 = vpack.c.bf16 %v464_v59, %v463_v52 }
 0x114   : > { %v353_v4 = vpop.xlane.xlu0 %352  ;;  %v426_v6 = vsub.f32 %v410_v62, %v418_v8 }
 0x115   : > { %v425_v7 = vsub.f32 %v409_v9, %v417_v63  ;;  %954 = vmatmul.mubr.msk.bf16.vlgmr.msra.gmra.mxu0 %vm268_vm0, %v922_v13  ;;  %970 = vmatmul.mubr.msk.bf16.vlgmr.msra.gmra.mxu1 %vm268_vm0, %v926_v53 }
 0x116   : > { %v434_v14 = vmax.f32 %v426_v6, 0.0 }
 0x117   : > { %v433_v15 = vmax.f32 %v425_v7, 0.0  ;;  %v388_v16 = vpop.xlane.xlu1 %387 }
 0x118   : > { %v385_v17 = vpop.xlane.xlu0 %384  ;;  %v442_v18 = vadd.f32 1e-05, %v434_v14  ;;  %v396_v20 = vadd.f32 %v388_v16, %v356_v3 }
 0x119   : > { %v441_v19 = vadd.f32 1e-05, %v433_v15  ;;  %v395_v21 = vadd.f32 %v385_v17, %v353_v4 }
 0x11a   : > { %1057 = vrsqrt.f32 %v442_v18  ;;  %v412_v23 = vmul.f32 0.0078125, %v396_v20 }
 0x11b   : > { %v411_v25 = vmul.f32 0.0078125, %v395_v21  ;;  %1059 = vrsqrt.f32 %v441_v19 }
 0x11c   : > { %v428_v26 = vsub.f32 %v412_v23, %v420_v22 }
 0x11d   : > { %v427_v27 = vsub.f32 %v411_v25, %v419_v24 }
 0x11e   : > { %v436_v30 = vmax.f32 %v428_v26, 0.0 }
 0x11f   : > { %v435_v31 = vmax.f32 %v427_v27, 0.0 }
 0x120   : > { %v444_v34 = vadd.f32 1e-05, %v436_v30 }
 0x121   : > { %v443_v35 = vadd.f32 1e-05, %v435_v31 }
 0x122   : > { %1061 = vrsqrt.f32 %v444_v34 }
 0x123   : > { %1063 = vrsqrt.f32 %v443_v35 }
 0x127   : > { %v1058_v42 = vpop.eup %1057 }
 0x128   : > { %v1060_v47 = vpop.eup %1059  ;;  %v490_v48 = vmul.f32 %v1058_v42, %v482_v39  ;;  %v466_v2 = vmul.f32 %v1058_v42, %v458_v38 }
 0x129   : > { %v489_v0 = vmul.f32 %v1060_v47, %v481_v46  ;;  %v465_v1 = vmul.f32 %v1060_v47, %v457_v43 }
 0x12b   : > { %v923_v28 = vpack.c.bf16 %v490_v48, %v489_v0  ;;  %v927_v29 = vpack.c.bf16 %v466_v2, %v465_v1 }
 0x12d   : > { %957 = vmatprep.mubr.msk.bf16.mxu0 %vm268_vm0, %v923_v28  ;;  %973 = vmatprep.mubr.msk.bf16.mxu1 %vm268_vm0, %v927_v29 }
 0x12f   : > { %v1062_v49 = vpop.eup %1061 }
 0x130   : > { %v1064_v5 = vpop.eup %1063  ;;  %v492_v50 = vmul.f32 %v1062_v49, %v484_v36  ;;  %v468_v51 = vmul.f32 %v1062_v49, %v460_v32 }
 0x131   : > { %v491_v54 = vmul.f32 %v1064_v5, %v483_v37  ;;  %v467_v55 = vmul.f32 %v1064_v5, %v459_v33 }
 0x133   : > { %v924_v56 = vpack.c.bf16 %v492_v50, %v491_v54  ;;  %v928_v57 = vpack.c.bf16 %v468_v51, %v467_v55 }
 0x135   : > { %958 = vmatmul.mubr.msk.bf16.gmra.mxu0 %vm268_vm0, %v924_v56  ;;  %974 = vmatmul.mubr.msk.bf16.gmra.mxu1 %vm268_vm0, %v928_v57 }
 0x1d5   : > { %v955_v40 = vpop.f32.mrf.mxu0  ;;  %v971_v41 = vpop.f32.mrf.mxu1 }
 0x1d6   : > { %v737_v45 = vadd.f32 %v971_v41, %v955_v40 }
 0x1d7   : > { %v607_v58 = vpop.f32.mrf.mxu0  ;;  %v728_v59 = vpop.f32.mrf.mxu1 }
 0x1d8   : > { %v768_v60 = vadd.f32 %v916_v44, %v737_v45  ;;  %v729_v8 = vadd.f32 %v728_v59, %v607_v58 }
 0x1d9   : > { %v956_v12 = vpop.f32.mrf.mxu0  ;;  %v972_v52 = vpop.f32.mrf.mxu1 }
 0x1da   : > { %776 = vst.msk [vmem:[%s1519_s30 + $0x10] sm:$0xff] %vm268_vm0, %v768_v60  ;;  %v766_v61 = vadd.f32 %v916_v44, %v729_v8  ;;  %v740_v62 = vadd.f32 %v972_v52, %v956_v12 }
 0x1db   : > { %v610_v63 = vpop.f32.mrf.mxu0  ;;  %v731_v9 = vpop.f32.mrf.mxu1 }
 0x1dc   : > { %774 = vst.msk [vmem:[%s1519_s30] sm:$0xff] %vm268_vm0, %v766_v61  ;;  %v769_v3 = vadd.f32 %v916_v44, %v740_v62  ;;  %v732_v4 = vadd.f32 %v731_v9, %v610_v63 }
 0x1de   : > { %777 = vst.msk [vmem:[%s1519_s30 + $0x18] sm:$0xff] %vm268_vm0, %v769_v3  ;;  %v767_v13 = vadd.f32 %v916_v44, %v732_v4 }
 0x1e0   : > { %775 = vst.msk [vmem:[%s1519_s30 + $0x8] sm:$0xff] %vm268_vm0, %v767_v13 }
 0x1f5   : > { %v959_v53 = vpop.f32.mrf.mxu0  ;;  %v975_v6 = vpop.f32.mrf.mxu1 }
 0x1f6   : > { %v753_v7 = vadd.f32 %v975_v6, %v959_v53 }
 0x1f7   : > { %v623_v10 = vpop.f32.mrf.mxu0  ;;  %v744_v11 = vpop.f32.mrf.mxu1 }
 0x1f8   : > { %v772_v14 = vadd.f32 %v916_v44, %v753_v7  ;;  %v745_v15 = vadd.f32 %v744_v11, %v623_v10 }
 0x1f9   : > { %v960_v16 = vpop.f32.mrf.mxu0  ;;  %v976_v17 = vpop.f32.mrf.mxu1 }
 0x1fa   : > { %780 = vst.msk [vmem:[%s1519_s30 + $0x30] sm:$0xff] %vm268_vm0, %v772_v14  ;;  %v770_v18 = vadd.f32 %v916_v44, %v745_v15  ;;  %v756_v19 = vadd.f32 %v976_v17, %v960_v16 }
 0x1fb   : > { %v626_v20 = vpop.f32.mrf.mxu0  ;;  %v747_v21 = vpop.f32.mrf.mxu1 }
 0x1fc   : > { %778 = vst.msk [vmem:[%s1519_s30 + $0x20] sm:$0xff] %vm268_vm0, %v770_v18  ;;  %v773_v22 = vadd.f32 %v916_v44, %v756_v19  ;;  %v748_v23 = vadd.f32 %v747_v21, %v626_v20 }
 0x1fe   : > { %781 = vst.msk [vmem:[%s1519_s30 + $0x38] sm:$0xff] %vm268_vm0, %v773_v22  ;;  %v771_v24 = vadd.f32 %v916_v44, %v748_v23 }
 0x200   : > { %779 = vst.msk [vmem:[%s1519_s30 + $0x28] sm:$0xff] %vm268_vm0, %v771_v24 }
 0x201 PF: > { %p15_p10 = scmp.ge.s32.totalorder %s1282_s10, 4   ;;  %s1567_s15 = smov %s1175_s16 }
 0x202   : > { %s1568_s16 = smov %s1179_s17  ;;  %s1569_s17 = smov %s1293_s14 }
 0x203   : > { %s1570_s18 = smov %s1282_s10  ;;  %17 = sbr.rel (!%p15_p10) target bundleno = 4 (0x4), region = 85 }
 0x208   :  { %804 = vsyncpa [#allocation3], 1 }
 0x209   :  { %806 = vsyncpa [#allocation3 + $0x1], 1 }
 0x20a   :  { %807 = vsyncpa [#allocation5], 1 }

</bundles_post_ra>
